<compile_context>
chip_gen: v7x
topology: tpu7x:2x2x1
jax: 0.10.0
libtpu: 0.0.40
codegen_flags: <defaults>
</compile_context>

<pallas_src>
import jax
import jax.numpy as jnp
from jax import lax
from jax.experimental import pallas as pl
from jax.experimental.pallas import tpu as pltpu


def _make_linear_kernel(n_feature, tk, nk, needs_f_mask):
    """Builds the kernel body for a given (static) F tiling."""

    def kernel(x_ref, w_ref, b_ref, o_ref, acc_ref):
        # x_ref: (TM, tk) VMEM tile, w_ref: (1, tk) VMEM slice,
        # b_ref: (1,) SMEM scalar, o_ref: (TM, 1), acc_ref: (TM, 1) f32 scratch.
        k = pl.program_id(1)

        @pl.when(k == 0)
        def _init():
            acc_ref[...] = jnp.zeros_like(acc_ref)

        prod = x_ref[...] * w_ref[...]                 # VPU elementwise, (TM, tk)
        if needs_f_mask:
            # Last F tile is partial: zero out-of-range lanes.
            lane = lax.broadcasted_iota(jnp.int32, prod.shape, 1)
            prod = jnp.where(k * tk + lane < n_feature, prod, 0.0)
        # XLU lane reduce -> (TM, 1), accumulated in f32 across the F axis.
        acc_ref[...] += jnp.sum(prod, axis=-1, keepdims=True)

        @pl.when(k == nk - 1)
        def _finalize():
            o_ref[...] = (acc_ref[...] + b_ref[0]).astype(o_ref.dtype)

    return kernel


def _round_up(n, m):
    return ((n + m - 1) // m) * m


def _round_down(n, m):
    return (n // m) * m


def linear_net_forward(x, weight, bias, *, lane_block=2048,
                       row_bytes_budget=24 * 1024 * 1024):
    """y = x @ weight.T + bias  (PyTorch nn.Linear(n_feature, 1) semantics).

    x: (B, F) f32, weight: (1, F) f32 (PyTorch layout), bias: (1,) f32.
    Returns (B, 1) f32.
    """
    B, F = x.shape
    assert weight.shape == (1, F) and bias.shape == (1,)
    assert lane_block % 128 == 0

    # ---- F (reduction) tiling: full extent when small, else 128-aligned tiles.
    if F <= lane_block:
        tk, nk = F, 1
    else:
        tk, nk = lane_block, pl.cdiv(F, lane_block)
    needs_f_mask = nk > 1 and (F % tk != 0)

    # ---- Row (batch) tiling: byte-budgeted so double-buffered x tiles,
    # lane-padded output tiles and the accumulator all fit comfortably in VMEM
    # on every generation (incl. v7x's 64 MiB).
    bytes_per_row = 2 * 4 * tk + 2 * 4 * 128 + 4 * 128   # x(x2) + out(x2) + acc
    rows_budget = max(8, _round_down(row_bytes_budget // bytes_per_row, 8))
    if B <= 8 or (rows_budget >= B and B < 16):
        tm = B                    # full-extent block (allowed by the (8,128) rule)
    elif rows_budget >= B:
        # Whole batch fits in one tile; split so the 'parallel' axis has >= 2
        # tiles (lets v7x shard across both TensorCores).
        tm = _round_up(pl.cdiv(B, 2), 8)
    else:
        tm = rows_budget          # multiple of 8; partial boundary tile is fine

    grid = (pl.cdiv(B, tm), nk)

    # ---- VMEM limit derived from actual tile sizes (+ headroom), capped for v7x.
    footprint = (2 * tm * tk * 4          # x, double-buffered
                 + 2 * 8 * tk * 4         # weight slice (sublane-padded)
                 + 2 * tm * 128 * 4       # output (lane-padded)
                 + tm * 128 * 4)          # accumulator scratch
    vmem_limit = int(min(max(footprint + (8 << 20), 16 << 20), 48 << 20))

    cost = pl.CostEstimate(
        flops=2 * B * F,
        transcendentals=0,
        bytes_accessed=4 * (B * F + F + B + 1),
    )

    kernel = _make_linear_kernel(F, tk, nk, needs_f_mask)

    return pl.pallas_call(
        kernel,
        out_shape=jax.ShapeDtypeStruct((B, 1), x.dtype),
        grid_spec=pltpu.PrefetchScalarGridSpec(
            num_scalar_prefetch=0,
            grid=grid,
            in_specs=[
                # x: streamed (row-tile, F-chunk) blocks, double-buffered.
                pl.BlockSpec((tm, tk), lambda i, k: (i, k)),
                # weight: the matching F-chunk (tiny; streams with k).
                pl.BlockSpec((1, tk), lambda i, k: (0, k)),
                # bias: single scalar in SMEM.
                pl.BlockSpec(memory_space=pltpu.MemorySpace.SMEM),
            ],
            out_specs=pl.BlockSpec((tm, 1), lambda i, k: (i, 0)),
            scratch_shapes=[pltpu.VMEM((tm, 1), jnp.float32)],
        ),
        compiler_params=pltpu.CompilerParams(
            # Batch tiles are independent -> parallel; F axis is the reduction.
            dimension_semantics=("parallel", "arbitrary"),
            vmem_limit_bytes=vmem_limit,
        ),
        cost_estimate=cost,
    )(x, weight, bias)


if __name__ == "__main__":
    key = jax.random.PRNGKey(0)
    kx, kw, kb, kx2, kw2 = jax.random.split(key, 5)

    # Shapes implied by LinearNet(n_feature).forward: x is (batch, n_feature).
    batch, n_feature = 8, 32
    x = jax.random.normal(kx, (batch, n_feature), dtype=jnp.float32)
    weight = jax.random.normal(kw, (1, n_feature), dtype=jnp.float32) * 0.01
    bias = jax.random.normal(kb, (1,), dtype=jnp.float32) * 0.01

    y = jax.block_until_ready(linear_net_forward(x, weight, bias))
    y_ref = x @ weight.T + bias
    assert y.shape == (batch, 1)
    assert jnp.allclose(y, y_ref, atol=1e-5), "mismatch vs reference (primary)"

    # Secondary check: non-divisible batch tile + tiled/masked F-reduction path.
    b2, f2 = 37, 200
    x2 = jax.random.normal(kx2, (b2, f2), dtype=jnp.float32)
    w2 = jax.random.normal(kw2, (1, f2), dtype=jnp.float32) * 0.01
    y2 = jax.block_until_ready(linear_net_forward(x2, w2, bias, lane_block=128))
    y2_ref = x2 @ w2.T + bias
    assert y2.shape == (b2, 1)
    assert jnp.allclose(y2, y2_ref, atol=1e-4), "mismatch vs reference (tiled-F)"

    print("KERNEL_OK")
</pallas_src>

<mosaic_0001>
module attributes {stable_mosaic.version = 11 : i64} {
  func.func @kernel(%arg0: i32, %arg1: i32, %arg2: memref<8x32xf32, #tpu.memory_space<vmem>>, %arg3: memref<1x32xf32, #tpu.memory_space<vmem>>, %arg4: memref<1xf32, #tpu.memory_space<smem>>, %arg5: memref<8x1xf32, #tpu.memory_space<vmem>>, %arg6: memref<8x1xf32, #tpu.memory_space<vmem>>) attributes {dimension_semantics = [#tpu.dimension_semantics<parallel>, #tpu.dimension_semantics<arbitrary>], iteration_bounds = array<i64: 1, 1>, scalar_prefetch = 0 : i64, scratch_operands = 1 : i64, tpu.core_type = #tpu.core_type<tc>, window_params = [{transform_indices = @transform_0, window_bounds = array<i64: 8, 32>}, {transform_indices = @transform_1, window_bounds = array<i64: 1, 32>}, {transform_indices = @transform_2, window_bounds = array<i64: 1>}, {transform_indices = @transform_3, window_bounds = array<i64: 8, 1>}]} {
    %c0_i32 = arith.constant 0 : i32
    %0 = arith.cmpi eq, %arg1, %c0_i32 : i32
    %1 = arith.extui %0 : i1 to i32
    %c0_i32_0 = arith.constant 0 : i32
    %2 = arith.cmpi ne, %1, %c0_i32_0 : i32
    scf.if %2 {
      %cst_10 = arith.constant 0.000000e+00 : f32
      %15 = vector.broadcast %cst_10 : f32 to vector<8x1xf32>
      %c0_11 = arith.constant 0 : index
      %c0_12 = arith.constant 0 : index
      %16 = vector.load %arg6[%c0_11, %c0_12] : memref<8x1xf32, #tpu.memory_space<vmem>>, vector<8x1xf32>
      tpu.vector_store %arg6[%c0_11, %c0_12], %15 {strides = array<i32>} : memref<8x1xf32, #tpu.memory_space<vmem>>, vector<8x1xf32>,
    } else {
    }
    %c0 = arith.constant 0 : index
    %c0_1 = arith.constant 0 : index
    %3 = vector.load %arg2[%c0, %c0_1] : memref<8x32xf32, #tpu.memory_space<vmem>>, vector<8x32xf32>
    %c0_2 = arith.constant 0 : index
    %c0_3 = arith.constant 0 : index
    %4 = vector.load %arg3[%c0_2, %c0_3] : memref<1x32xf32, #tpu.memory_space<vmem>>, vector<1x32xf32>
    %5 = vector.broadcast %4 : vector<1x32xf32> to vector<8x32xf32>
    %6 = arith.mulf %3, %5 : vector<8x32xf32>
    %c0_4 = arith.constant 0 : index
    %c0_5 = arith.constant 0 : index
    %7 = vector.load %arg6[%c0_4, %c0_5] : memref<8x1xf32, #tpu.memory_space<vmem>>, vector<8x1xf32>
    %cst = arith.constant dense<0.000000e+00> : vector<8xf32>
    %8 = vector.multi_reduction <add>, %6, %cst [1] : vector<8x32xf32> to vector<8xf32>
    %9 = vector.shape_cast %8 : vector<8xf32> to vector<8x1xf32>
    %10 = arith.addf %7, %9 : vector<8x1xf32>
    %c0_6 = arith.constant 0 : index
    %c0_7 = arith.constant 0 : index
    %11 = vector.load %arg6[%c0_6, %c0_7] : memref<8x1xf32, #tpu.memory_space<vmem>>, vector<8x1xf32>
    tpu.vector_store %arg6[%c0_6, %c0_7], %10 {strides = array<i32>} : memref<8x1xf32, #tpu.memory_space<vmem>>, vector<8x1xf32>,
    %c0_i32_8 = arith.constant 0 : i32
    %12 = arith.cmpi eq, %arg1, %c0_i32_8 : i32
    %13 = arith.extui %12 : i1 to i32
    %c0_i32_9 = arith.constant 0 : i32
    %14 = arith.cmpi ne, %13, %c0_i32_9 : i32
    scf.if %14 {
      %c0_10 = arith.constant 0 : index
      %c0_11 = arith.constant 0 : index
      %15 = vector.load %arg6[%c0_10, %c0_11] : memref<8x1xf32, #tpu.memory_space<vmem>>, vector<8x1xf32>
      %c0_12 = arith.constant 0 : index
      %16 = memref.load %arg4[%c0_12] : memref<1xf32, #tpu.memory_space<smem>>
      %17 = vector.broadcast %16 : f32 to vector<8x1xf32>
      %18 = arith.addf %15, %17 : vector<8x1xf32>
      %c0_13 = arith.constant 0 : index
      %c0_14 = arith.constant 0 : index
      %19 = vector.load %arg5[%c0_13, %c0_14] : memref<8x1xf32, #tpu.memory_space<vmem>>, vector<8x1xf32>
      tpu.vector_store %arg5[%c0_13, %c0_14], %18 {strides = array<i32>} : memref<8x1xf32, #tpu.memory_space<vmem>>, vector<8x1xf32>,
    } else {
    }
    return
  }
  func.func @transform_0(%arg0: i32, %arg1: i32) -> (i32, i32) {
    %c0_i32 = arith.constant 0 : i32
    return %arg0, %arg1 : i32, i32
  }
  func.func @transform_1(%arg0: i32, %arg1: i32) -> (i32, i32) {
    %c0_i32 = arith.constant 0 : i32
    %c0_i32_0 = arith.constant 0 : i32
    return %c0_i32, %arg1 : i32, i32
  }
  func.func @transform_2(%arg0: i32, %arg1: i32) -> i32 {
    %c0_i32 = arith.constant 0 : i32
    %c0_i32_0 = arith.constant 0 : i32
    return %c0_i32 : i32
  }
  func.func @transform_3(%arg0: i32, %arg1: i32) -> (i32, i32) {
    %c0_i32 = arith.constant 0 : i32
    %c0_i32_0 = arith.constant 0 : i32
    return %arg0, %c0_i32 : i32, i32
  }
}

</mosaic_0001>

<bundles_post_ra>
// kernel: tpu_custom_call.1
= control target key start
LH: loop header
LB: loop body
LE: loop exit
PB: predicated region body
PF: predicated region fallthrough
CT: control target
= control target key end

     0   :  { %9 = vsyncpa [#allocation5], 0  ;;  %s90_s12 = smov [#allocation4]   ;;  %s136_s0 = inlined_call_operand.hbm [shape: f32[8,32], index: 0, kind: input, shape index: {}]   ;;  %s137_s1 = inlined_call_operand.vmem [shape: f32[1,32], index: 1, kind: input, shape index: {}]   ;;  %s138_s2 = inlined_call_operand.<no memory space> [shape: f32[1], index: 2, kind: input, shape index: {}]   ;;  %s139_s3 = inlined_call_operand.vmem [shape: f32[8,1], index: 3, kind: output, shape index: {}]  }
   0x1   :  { %s16_s13 = sshll.u32 %s90_s12, 4  ;;  %s66_s16 = scalar_lea.hbm %s136_s0, 128  ;;  %s17_s13 = int_to_ptr.vmem [resolvable:$true] %s16_s13 }
   0x2   :  { %p67_p0 = scmp.ne.s32.totalorder %s136_s0, %s66_s16  ;;  %p70_p1 = scmp.lt.u32.totalorder %s66_s16, %s136_s0 }
   0x4   :  { %p72_p2 = pnand %p70_p1, %p67_p0 }
   0x6   :  { %75 = shalt.err (!%p72_p2)
}
   0x7   :  { %s76_s21 = scalar_lea.vmem %s17_s13, 128  ;;  %p81_p4 = scmp.lt.s32.totalorder %s17_s13, %s17_s13 }
   0x8   :  { %p77_p3 = scmp.ne.s32.totalorder %s17_s13, %s76_s21  ;;  %p82_p5 = scmp.lt.s32.totalorder %s76_s21, %s76_s21 }
   0xa   :  { %p83_p6 = por %p82_p5, %p81_p4 }
   0xc   :  { %p84_p7 = pnand %p83_p6, %p77_p3 }
   0xe   :  { %87 = shalt.err (!%p84_p7)
}
   0xf   :  { %19 = dma.hbm_to_vmem [thread:$0]  %s136_s0, 128, %s17_s13, [#allocation5]  }
  0x10   :  { %88 = dma.done.wait [#allocation5], 128  }
  0x11   :  { %89 = vsyncadd [#allocation5], 4294967168  ;;  %vm31_vm0 = vcmask 7168   ;;  %v91_v0 = vmov 0.0   ;;  %v33_v1 = vld [vmem:[#allocation4] sm:$0xff]  ;;  %vm43_vm1 = vcmask 261120   ;;  %v55_v8 = vstv %s138_s2 }
  0x12   :  { %32 = vst.msk [vmem:[#allocation2] sm:$0xff] %vm31_vm0, %v91_v0  ;;  %v63_v2 = vld [vmem:[%s137_s1] ss:$0 sm:$0xff] }
  0x13   :  { %v41_v3 = vmul.f32 %v63_v2, %v33_v1 }
  0x15   :  { %v44_v4 = vsel %vm43_vm1, %v41_v3, 0.0 }
  0x16   :  { %45 = vadd.xlane.f32.xlu0 %v44_v4 }
  0x19   :  { %v42_v5 = vld [vmem:[#allocation2] sm:$0xff] }
  0xa3   :  { %v46_v6 = vpop.xlane.xlu0 %45 }
  0xa4   :  { %v47_v7 = vadd.f32 %v46_v6, %v42_v5 }
  0xa6   :  { %49 = vst.msk [vmem:[#allocation2] sm:$0xff] %vm31_vm0, %v47_v7 }
  0xad   :  { %v53_v9 = vld [vmem:[#allocation2] sm:$0xff] }
  0xae   :  { %v56_v10 = vadd.f32 %v55_v8, %v53_v9 }
  0xb0   :  { %57 = vst.msk [vmem:[%s139_s3] sm:$0xff] %vm31_vm0, %v56_v10 }
  0xb1   :  { %62 = vsyncpa [#allocation5], 1 }

</bundles_post_ra>
